<compile_context>
chip_gen: v6e
topology: v6e:2x2x1
jax: 0.10.0
libtpu: 0.0.40
codegen_flags: <defaults>
</compile_context>

<pallas_src>
import functools

import jax
import jax.numpy as jnp
import numpy as np
from jax.experimental import pallas as pl
from jax.experimental.pallas import tpu as pltpu


def _round_up(x, m):
    return (x + m - 1) // m * m


# ----------------------------------------------------------------------------
# Kernel 1: encoder + fused top-k/scatter + decoder + per-tile fired counts
# ----------------------------------------------------------------------------
def _sae_main_kernel(x_ref, pre_b_ref, lat_b_ref, w_enc_ref, w_dec_ref,
                     recons_ref, fired_ref, *, k, batch_block, batch_real):
    x = x_ref[...]                       # [Bt, Dp] f32
    pre_bias = pre_b_ref[...]            # [1, Dp]  f32
    lat_bias = lat_b_ref[...]            # [1, Fp]  f32
    w_enc = w_enc_ref[...]               # [Dp, Fp] bf16
    w_dec = w_dec_ref[...]               # [Fp, Dp] bf16

    # Encoder: bf16 operands, f32 accumulation on the MXU.
    xc = (x - pre_bias).astype(jnp.bfloat16)
    pre = jnp.dot(xc, w_enc, preferred_element_type=jnp.float32) + lat_bias

    bt, fp = pre.shape
    col_ids = jax.lax.broadcasted_iota(jnp.int32, (bt, fp), 1)

    # Padded batch rows must not contribute to the fired counts.
    row_ids = (jax.lax.broadcasted_iota(jnp.int32, (bt, 1), 0)
               + pl.program_id(0) * batch_block)
    row_valid = (row_ids < batch_real).astype(jnp.float32)        # [Bt, 1]

    # Fused iterative top-k + scatter (tie-break to lowest index, like topk).
    work = pre
    latents = jnp.zeros((bt, fp), jnp.float32)
    sel = jnp.zeros((bt, fp), jnp.float32)
    neg_inf = jnp.float32(-jnp.inf)
    for _ in range(k):
        m = jnp.max(work, axis=-1, keepdims=True)                 # [Bt, 1]
        is_max = work == m
        idx = jnp.min(jnp.where(is_max, col_ids, fp), axis=-1,
                      keepdims=True)                               # [Bt, 1]
        onehot_b = col_ids == idx
        onehot = onehot_b.astype(jnp.float32)
        latents = latents + onehot * jnp.maximum(m, 0.0)           # relu(val)
        sel = sel + onehot * (idx > 0).astype(jnp.float32)         # idx>0 rule
        work = jnp.where(onehot_b, neg_inf, work)

    # Decoder: bf16 operands, f32 accumulation.
    recons = jnp.dot(latents.astype(jnp.bfloat16), w_dec,
                     preferred_element_type=jnp.float32) + pre_bias
    recons_ref[...] = recons.astype(recons_ref.dtype)

    # Per-tile fired counts written as a full lane-dense (8, Fp) block
    # (row 0 = counts, rows 1..7 = 0); reduced across tiles in the wrapper.
    fired_rows = jnp.sum(sel * row_valid, axis=0, keepdims=True)   # [1, Fp]
    sub_ids = jax.lax.broadcasted_iota(jnp.int32, (8, fp), 0)
    fired_ref[...] = jnp.where(sub_ids == 0, fired_rows, 0.0)


# ----------------------------------------------------------------------------
# Kernel 2: auxk path (dead-feature masked top-k), lane-dense padded outputs
# ----------------------------------------------------------------------------
def _sae_auxk_kernel(x_ref, pre_b_ref, lat_b_ref, w_enc_ref, dead_ref,
                     aidx_ref, aval_ref, *, auxk, aux_pad):
    x = x_ref[...]
    pre_bias = pre_b_ref[...]
    lat_bias = lat_b_ref[...]
    w_enc = w_enc_ref[...]
    dead = dead_ref[...]                                           # [1, Fp]

    xc = (x - pre_bias).astype(jnp.bfloat16)
    pre = jnp.dot(xc, w_enc, preferred_element_type=jnp.float32) + lat_bias

    bt, fp = pre.shape
    col_ids = jax.lax.broadcasted_iota(jnp.int32, (bt, fp), 1)
    out_cols = jax.lax.broadcasted_iota(jnp.int32, (bt, aux_pad), 1)

    work = pre * dead                                              # auxk_mask_
    aidx = jnp.zeros((bt, aux_pad), jnp.int32)
    aval = jnp.zeros((bt, aux_pad), jnp.float32)
    neg_inf = jnp.float32(-jnp.inf)
    for t in range(auxk):
        m = jnp.max(work, axis=-1, keepdims=True)
        is_max = work == m
        idx = jnp.min(jnp.where(is_max, col_ids, fp), axis=-1, keepdims=True)
        slot = out_cols == t
        aidx = jnp.where(slot, idx, aidx)
        aval = jnp.where(slot, jnp.maximum(m, 0.0), aval)
        work = jnp.where(col_ids == idx, neg_inf, work)

    aidx_ref[...] = aidx
    aval_ref[...] = aval


# ----------------------------------------------------------------------------
# Wrapper
# ----------------------------------------------------------------------------
def tms_autoencoder_forward(x, pre_bias, latent_bias, W_enc, W_dec,
                            stats_last_nonzero, *, k, dead_steps_threshold,
                            auxk=None, block_b=128):
    B, D = x.shape
    F = W_enc.shape[1]

    # Padded / tiled geometry: lane-dense, MXU-friendly (multiples of 8 x 128).
    dp = _round_up(D, 128)
    fp = _round_up(F, 128)
    bt = _round_up(max(8, min(block_b, _round_up(B, 8))), 8)
    bp = _round_up(B, bt)
    nb = bp // bt
    aux_pad = _round_up(max(auxk, 1), 128) if auxk is not None else 0

    f32, bf16 = jnp.float32, jnp.bfloat16
    x_p = jnp.zeros((bp, dp), f32).at[:B, :D].set(x.astype(f32))
    pre_b = jnp.zeros((1, dp), f32).at[0, :D].set(pre_bias.astype(f32))
    # Padded feature columns get a huge negative bias so they never win top-k.
    lat_b = jnp.full((1, fp), -1e30, f32).at[0, :F].set(latent_bias.astype(f32))
    w_enc_p = jnp.zeros((dp, fp), bf16).at[:D, :F].set(W_enc.astype(bf16))
    w_dec_p = jnp.zeros((fp, dp), bf16).at[:F, :D].set(W_dec.astype(bf16))

    weight_bytes = int(w_enc_p.size) * 2 + int(w_dec_p.size) * 2
    io_bytes = (int(x_p.size) + int(pre_b.size) + int(lat_b.size)) * 4

    def _vmem_limit(block_bytes):
        # Resident weights + double-buffered batch tiles + slack,
        # capped at v7x physical VMEM (64 MiB).
        est = weight_bytes + 2 * block_bytes + 4 * (dp + fp) + (8 << 20)
        return int(min(max(est, 16 << 20), 64 << 20))

    # ---------------- main kernel: recons + per-tile fired counts -----------
    compiler1 = pltpu.CompilerParams(
        dimension_semantics=("parallel",),
        vmem_limit_bytes=_vmem_limit((2 * bt * dp + 8 * fp) * 4),
    )
    cost1 = pl.CostEstimate(
        flops=4 * bp * dp * fp,                    # encoder + decoder matmuls
        transcendentals=0,
        bytes_accessed=weight_bytes + io_bytes + (bp * dp + nb * 8 * fp) * 4,
    )
    kernel1 = functools.partial(_sae_main_kernel, k=k, batch_block=bt,
                                batch_real=B)
    recons_p, fired = pl.pallas_call(
        kernel1,
        grid=(nb,),
        in_specs=[
            pl.BlockSpec((bt, dp), lambda i: (i, 0)),   # x batch tile
            pl.BlockSpec((1, dp), lambda i: (0, 0)),    # pre_bias (resident)
            pl.BlockSpec((1, fp), lambda i: (0, 0)),    # latent_bias (resident)
            pl.BlockSpec((dp, fp), lambda i: (0, 0)),   # W_enc (resident)
            pl.BlockSpec((fp, dp), lambda i: (0, 0)),   # W_dec (resident)
        ],
        out_specs=(
            pl.BlockSpec((bt, dp), lambda i: (i, 0)),   # recons tile
            pl.BlockSpec((8, fp), lambda i: (i, 0)),    # per-tile fired block
        ),
        out_shape=(
            jax.ShapeDtypeStruct((bp, dp), jnp.float32),
            jax.ShapeDtypeStruct((nb * 8, fp), jnp.float32),
        ),
        compiler_params=compiler1,
        cost_estimate=cost1,
    )(x_p, pre_b, lat_b, w_enc_p, w_dec_p)

    recons = recons_p[:B, :D].astype(x.dtype)

    # Stats update: needs the full-batch reduction before the auxk mask.
    tmp_counts = jnp.sum(fired, axis=0)[:F]
    tmp = jnp.minimum(tmp_counts, 1.0).astype(stats_last_nonzero.dtype)
    stats_new = stats_last_nonzero * (1 - tmp) + 1

    auxk_idxs, auxk_vals = None, None
    if auxk is not None:
        dead = (stats_new > dead_steps_threshold).astype(f32)
        # Padded feature columns: dead=1 so their -1e30 pre-act stays -1e30
        # (a 0-masked pad column could otherwise tie with real zeros).
        dead_p = jnp.ones((1, fp), f32).at[0, :F].set(dead)

        compiler2 = pltpu.CompilerParams(
            dimension_semantics=("parallel",),
            vmem_limit_bytes=_vmem_limit(
                (bt * dp + 2 * bt * aux_pad + fp) * 4),
        )
        cost2 = pl.CostEstimate(
            flops=2 * bp * dp * fp,
            transcendentals=0,
            bytes_accessed=int(w_enc_p.size) * 2 + io_bytes
            + (fp + 2 * bp * aux_pad) * 4,
        )
        kernel2 = functools.partial(_sae_auxk_kernel, auxk=auxk,
                                    aux_pad=aux_pad)
        aidx_p, aval_p = pl.pallas_call(
            kernel2,
            grid=(nb,),
            in_specs=[
                pl.BlockSpec((bt, dp), lambda i: (i, 0)),
                pl.BlockSpec((1, dp), lambda i: (0, 0)),
                pl.BlockSpec((1, fp), lambda i: (0, 0)),
                pl.BlockSpec((dp, fp), lambda i: (0, 0)),
                pl.BlockSpec((1, fp), lambda i: (0, 0)),
            ],
            out_specs=(
                pl.BlockSpec((bt, aux_pad), lambda i: (i, 0)),
                pl.BlockSpec((bt, aux_pad), lambda i: (i, 0)),
            ),
            out_shape=(
                jax.ShapeDtypeStruct((bp, aux_pad), jnp.int32),
                jax.ShapeDtypeStruct((bp, aux_pad), jnp.float32),
            ),
            compiler_params=compiler2,
            cost_estimate=cost2,
        )(x_p, pre_b, lat_b, w_enc_p, dead_p)

        auxk_idxs = aidx_p[:B, :auxk]
        auxk_vals = aval_p[:B, :auxk]

    return recons, dict(auxk_idxs=auxk_idxs, auxk_vals=auxk_vals), stats_new


# ----------------------------------------------------------------------------
# Pure-JAX reference (mirrors the PyTorch forward, same bf16 quantization)
# ----------------------------------------------------------------------------
def reference_forward(x, pre_bias, latent_bias, W_enc, W_dec, stats,
                      *, k, dead_steps_threshold, auxk):
    xc = (x - pre_bias).astype(jnp.bfloat16)
    pre = jnp.dot(xc, W_enc.astype(jnp.bfloat16),
                  preferred_element_type=jnp.float32) + latent_bias
    F = pre.shape[-1]

    topk_vals, topk_idxs = jax.lax.top_k(pre, k)
    topk_vals = jnp.maximum(topk_vals, 0.0)

    src = (topk_idxs > 0).astype(jnp.int32).reshape(-1)
    tmp = jnp.zeros((F,), jnp.int32).at[topk_idxs.reshape(-1)].add(src)
    stats_new = stats.astype(jnp.int32) * (1 - jnp.minimum(tmp, 1)) + 1

    latents = jnp.sum(jax.nn.one_hot(topk_idxs, F, dtype=jnp.float32)
                      * topk_vals[..., None], axis=1)
    recons = jnp.dot(latents.astype(jnp.bfloat16), W_dec.astype(jnp.bfloat16),
                     preferred_element_type=jnp.float32) + pre_bias

    if auxk is not None:
        masked = pre * (stats_new > dead_steps_threshold).astype(pre.dtype)
        avals, aidxs = jax.lax.top_k(masked, auxk)
        avals = jnp.maximum(avals, 0.0)
    else:
        aidxs, avals = None, None
    return recons, aidxs, avals, stats_new


# ----------------------------------------------------------------------------
# Main
# ----------------------------------------------------------------------------
if __name__ == "__main__":
    B = 48
    d_model = 32
    n_features = 192
    k = 4
    auxk = 3
    dead_steps_threshold = 1

    key = jax.random.PRNGKey(0)
    kx, kw = jax.random.split(key)

    # Parameter init matching the module: xavier_normal W_enc, W_dec = W_enc.T
    # unit-normed along dim=1, zero biases.
    xavier_std = float(np.sqrt(2.0 / (d_model + n_features)))
    W_enc = xavier_std * jax.random.normal(kw, (d_model, n_features), jnp.float32)
    W_dec = W_enc.T
    W_dec = W_dec / jnp.linalg.norm(W_dec, axis=1, keepdims=True)
    pre_bias = jnp.zeros((d_model,), jnp.float32)
    latent_bias = jnp.zeros((n_features,), jnp.float32)
    # Non-trivial buffer state so the dead-feature mask is actually exercised.
    stats_last_nonzero = (jnp.arange(n_features, dtype=jnp.int32) % 3)

    x = jax.random.normal(kx, (B, d_model), jnp.float32)

    recons, aux_dict, stats_new = tms_autoencoder_forward(
        x, pre_bias, latent_bias, W_enc, W_dec, stats_last_nonzero,
        k=k, dead_steps_threshold=dead_steps_threshold, auxk=auxk,
        block_b=16)   # small batch tile so the demo exercises a 3-step grid
    jax.block_until_ready(recons)

    ref_recons, ref_aidx, ref_avals, ref_stats = reference_forward(
        x, pre_bias, latent_bias, W_enc, W_dec, stats_last_nonzero,
        k=k, dead_steps_threshold=dead_steps_threshold, auxk=auxk)

    np.testing.assert_allclose(np.asarray(recons), np.asarray(ref_recons),
                               rtol=2e-2, atol=2e-2)
    np.testing.assert_array_equal(np.asarray(stats_new), np.asarray(ref_stats))
    np.testing.assert_array_equal(np.asarray(aux_dict["auxk_idxs"]),
                                  np.asarray(ref_aidx))
    np.testing.assert_allclose(np.asarray(aux_dict["auxk_vals"]),
                               np.asarray(ref_avals), rtol=2e-3, atol=2e-3)

    print("KERNEL_OK")
</pallas_src>

<mosaic_0001>
module attributes {stable_mosaic.version = 11 : i64} {
  func.func @_sae_main_kernel(%arg0: i32, %arg1: memref<16x128xf32, #tpu.memory_space<vmem>>, %arg2: memref<1x128xf32, #tpu.memory_space<vmem>>, %arg3: memref<1x256xf32, #tpu.memory_space<vmem>>, %arg4: memref<128x256xbf16, #tpu.memory_space<vmem>>, %arg5: memref<256x128xbf16, #tpu.memory_space<vmem>>, %arg6: memref<16x128xf32, #tpu.memory_space<vmem>>, %arg7: memref<8x256xf32, #tpu.memory_space<vmem>>) attributes {dimension_semantics = [#tpu.dimension_semantics<parallel>], iteration_bounds = array<i64: 3>, scalar_prefetch = 0 : i64, scratch_operands = 0 : i64, tpu.core_type = #tpu.core_type<tc>, window_params = [{transform_indices = @transform_0, window_bounds = array<i64: 16, 128>}, {pipeline_mode = #tpu.pipeline_mode<synchronous>, transform_indices = @transform_1, window_bounds = array<i64: 1, 128>}, {pipeline_mode = #tpu.pipeline_mode<synchronous>, transform_indices = @transform_2, window_bounds = array<i64: 1, 256>}, {pipeline_mode = #tpu.pipeline_mode<synchronous>, transform_indices = @transform_3, window_bounds = array<i64: 128, 256>}, {pipeline_mode = #tpu.pipeline_mode<synchronous>, transform_indices = @transform_4, window_bounds = array<i64: 256, 128>}, {transform_indices = @transform_5, window_bounds = array<i64: 16, 128>}, {transform_indices = @transform_6, window_bounds = array<i64: 8, 256>}]} {
    %c0 = arith.constant 0 : index
    %c0_0 = arith.constant 0 : index
    %0 = vector.load %arg1[%c0, %c0_0] : memref<16x128xf32, #tpu.memory_space<vmem>>, vector<16x128xf32>
    %c0_1 = arith.constant 0 : index
    %c0_2 = arith.constant 0 : index
    %1 = vector.load %arg2[%c0_1, %c0_2] : memref<1x128xf32, #tpu.memory_space<vmem>>, vector<1x128xf32>
    %c0_3 = arith.constant 0 : index
    %c0_4 = arith.constant 0 : index
    %2 = vector.load %arg3[%c0_3, %c0_4] : memref<1x256xf32, #tpu.memory_space<vmem>>, vector<1x256xf32>
    %c0_5 = arith.constant 0 : index
    %c0_6 = arith.constant 0 : index
    %3 = vector.load %arg4[%c0_5, %c0_6] : memref<128x256xbf16, #tpu.memory_space<vmem>>, vector<128x256xbf16>
    %c0_7 = arith.constant 0 : index
    %c0_8 = arith.constant 0 : index
    %4 = vector.load %arg5[%c0_7, %c0_8] : memref<256x128xbf16, #tpu.memory_space<vmem>>, vector<256x128xbf16>
    %5 = vector.broadcast %1 : vector<1x128xf32> to vector<16x128xf32>
    %6 = arith.subf %0, %5 : vector<16x128xf32>
    %7 = arith.truncf %6 : vector<16x128xf32> to vector<16x128xbf16>
    %cst = arith.constant dense<0.000000e+00> : vector<16x256xf32>
    %8 = tpu.matmul %7, %3, %cst {dimension_numbers = #tpu.dot_dimension_numbers<[1], [0], [0], [1], [0, 0, 1, 1], [], []>} : vector<16x128xbf16>, vector<128x256xbf16>, vector<16x256xf32> -> vector<16x256xf32>
    %9 = vector.broadcast %2 : vector<1x256xf32> to vector<16x256xf32>
    %10 = arith.addf %8, %9 : vector<16x256xf32>
    %11 = tpu.iota {dimensions = array<i32: 1>} : vector<16x256xi32>
    %12 = tpu.iota {dimensions = array<i32: 0>} : vector<16x1xi32>
    %c16_i32 = arith.constant 16 : i32
    %13 = arith.muli %arg0, %c16_i32 : i32
    %14 = vector.broadcast %13 : i32 to vector<16x1xi32>
    %15 = arith.addi %12, %14 : vector<16x1xi32>
    %c48_i32 = arith.constant 48 : i32
    %16 = vector.broadcast %c48_i32 : i32 to vector<16x1xi32>
    %17 = arith.cmpi slt, %15, %16 : vector<16x1xi32>
    %18 = arith.extui %17 : vector<16x1xi1> to vector<16x1xi32>
    %19 = arith.sitofp %18 : vector<16x1xi32> to vector<16x1xf32>
    %cst_9 = arith.constant 0.000000e+00 : f32
    %20 = vector.broadcast %cst_9 : f32 to vector<16x256xf32>
    %cst_10 = arith.constant 0.000000e+00 : f32
    %21 = vector.broadcast %cst_10 : f32 to vector<16x256xf32>
    %cst_11 = arith.constant dense<0xFF800000> : vector<16xf32>
    %22 = vector.multi_reduction <maximumf>, %10, %cst_11 [1] : vector<16x256xf32> to vector<16xf32>
    %23 = vector.shape_cast %22 : vector<16xf32> to vector<16x1xf32>
    %24 = vector.broadcast %23 : vector<16x1xf32> to vector<16x256xf32>
    %25 = arith.cmpf oeq, %10, %24 : vector<16x256xf32>
    %c256_i32 = arith.constant 256 : i32
    %26 = vector.broadcast %c256_i32 : i32 to vector<16x256xi32>
    %27 = arith.select %25, %11, %26 : vector<16x256xi1>, vector<16x256xi32>
    %cst_12 = arith.constant dense<2147483647> : vector<16xi32>
    %28 = vector.multi_reduction <minsi>, %27, %cst_12 [1] : vector<16x256xi32> to vector<16xi32>
    %29 = vector.shape_cast %28 : vector<16xi32> to vector<16x1xi32>
    %30 = vector.broadcast %29 : vector<16x1xi32> to vector<16x256xi32>
    %31 = arith.cmpi eq, %11, %30 : vector<16x256xi32>
    %32 = arith.extui %31 : vector<16x256xi1> to vector<16x256xi32>
    %33 = arith.sitofp %32 : vector<16x256xi32> to vector<16x256xf32>
    %cst_13 = arith.constant 0.000000e+00 : f32
    %34 = vector.broadcast %cst_13 : f32 to vector<16x1xf32>
    %35 = arith.maximumf %23, %34 : vector<16x1xf32>
    %36 = vector.broadcast %35 : vector<16x1xf32> to vector<16x256xf32>
    %37 = arith.mulf %33, %36 : vector<16x256xf32>
    %38 = arith.addf %20, %37 : vector<16x256xf32>
    %c0_i32 = arith.constant 0 : i32
    %39 = vector.broadcast %c0_i32 : i32 to vector<16x1xi32>
    %40 = arith.cmpi sgt, %29, %39 : vector<16x1xi32>
    %41 = arith.extui %40 : vector<16x1xi1> to vector<16x1xi32>
    %42 = arith.sitofp %41 : vector<16x1xi32> to vector<16x1xf32>
    %43 = vector.broadcast %42 : vector<16x1xf32> to vector<16x256xf32>
    %44 = arith.mulf %33, %43 : vector<16x256xf32>
    %45 = arith.addf %21, %44 : vector<16x256xf32>
    %cst_14 = arith.constant 0xFF800000 : f32
    %46 = vector.broadcast %cst_14 : f32 to vector<16x256xf32>
    %47 = arith.select %31, %46, %10 : vector<16x256xi1>, vector<16x256xf32>
    %cst_15 = arith.constant dense<0xFF800000> : vector<16xf32>
    %48 = vector.multi_reduction <maximumf>, %47, %cst_15 [1] : vector<16x256xf32> to vector<16xf32>
    %49 = vector.shape_cast %48 : vector<16xf32> to vector<16x1xf32>
    %50 = vector.broadcast %49 : vector<16x1xf32> to vector<16x256xf32>
    %51 = arith.cmpf oeq, %47, %50 : vector<16x256xf32>
    %c256_i32_16 = arith.constant 256 : i32
    %52 = vector.broadcast %c256_i32_16 : i32 to vector<16x256xi32>
    %53 = arith.select %51, %11, %52 : vector<16x256xi1>, vector<16x256xi32>
    %cst_17 = arith.constant dense<2147483647> : vector<16xi32>
    %54 = vector.multi_reduction <minsi>, %53, %cst_17 [1] : vector<16x256xi32> to vector<16xi32>
    %55 = vector.shape_cast %54 : vector<16xi32> to vector<16x1xi32>
    %56 = vector.broadcast %55 : vector<16x1xi32> to vector<16x256xi32>
    %57 = arith.cmpi eq, %11, %56 : vector<16x256xi32>
    %58 = arith.extui %57 : vector<16x256xi1> to vector<16x256xi32>
    %59 = arith.sitofp %58 : vector<16x256xi32> to vector<16x256xf32>
    %cst_18 = arith.constant 0.000000e+00 : f32
    %60 = vector.broadcast %cst_18 : f32 to vector<16x1xf32>
    %61 = arith.maximumf %49, %60 : vector<16x1xf32>
    %62 = vector.broadcast %61 : vector<16x1xf32> to vector<16x256xf32>
    %63 = arith.mulf %59, %62 : vector<16x256xf32>
    %64 = arith.addf %38, %63 : vector<16x256xf32>
    %c0_i32_19 = arith.constant 0 : i32
    %65 = vector.broadcast %c0_i32_19 : i32 to vector<16x1xi32>
    %66 = arith.cmpi sgt, %55, %65 : vector<16x1xi32>
    %67 = arith.extui %66 : vector<16x1xi1> to vector<16x1xi32>
    %68 = arith.sitofp %67 : vector<16x1xi32> to vector<16x1xf32>
    %69 = vector.broadcast %68 : vector<16x1xf32> to vector<16x256xf32>
    %70 = arith.mulf %59, %69 : vector<16x256xf32>
    %71 = arith.addf %45, %70 : vector<16x256xf32>
    %cst_20 = arith.constant 0xFF800000 : f32
    %72 = vector.broadcast %cst_20 : f32 to vector<16x256xf32>
    %73 = arith.select %57, %72, %47 : vector<16x256xi1>, vector<16x256xf32>
    %cst_21 = arith.constant dense<0xFF800000> : vector<16xf32>
    %74 = vector.multi_reduction <maximumf>, %73, %cst_21 [1] : vector<16x256xf32> to vector<16xf32>
    %75 = vector.shape_cast %74 : vector<16xf32> to vector<16x1xf32>
    %76 = vector.broadcast %75 : vector<16x1xf32> to vector<16x256xf32>
    %77 = arith.cmpf oeq, %73, %76 : vector<16x256xf32>
    %c256_i32_22 = arith.constant 256 : i32
    %78 = vector.broadcast %c256_i32_22 : i32 to vector<16x256xi32>
    %79 = arith.select %77, %11, %78 : vector<16x256xi1>, vector<16x256xi32>
    %cst_23 = arith.constant dense<2147483647> : vector<16xi32>
    %80 = vector.multi_reduction <minsi>, %79, %cst_23 [1] : vector<16x256xi32> to vector<16xi32>
    %81 = vector.shape_cast %80 : vector<16xi32> to vector<16x1xi32>
    %82 = vector.broadcast %81 : vector<16x1xi32> to vector<16x256xi32>
    %83 = arith.cmpi eq, %11, %82 : vector<16x256xi32>
    %84 = arith.extui %83 : vector<16x256xi1> to vector<16x256xi32>
    %85 = arith.sitofp %84 : vector<16x256xi32> to vector<16x256xf32>
    %cst_24 = arith.constant 0.000000e+00 : f32
    %86 = vector.broadcast %cst_24 : f32 to vector<16x1xf32>
    %87 = arith.maximumf %75, %86 : vector<16x1xf32>
    %88 = vector.broadcast %87 : vector<16x1xf32> to vector<16x256xf32>
    %89 = arith.mulf %85, %88 : vector<16x256xf32>
    %90 = arith.addf %64, %89 : vector<16x256xf32>
    %c0_i32_25 = arith.constant 0 : i32
    %91 = vector.broadcast %c0_i32_25 : i32 to vector<16x1xi32>
    %92 = arith.cmpi sgt, %81, %91 : vector<16x1xi32>
    %93 = arith.extui %92 : vector<16x1xi1> to vector<16x1xi32>
    %94 = arith.sitofp %93 : vector<16x1xi32> to vector<16x1xf32>
    %95 = vector.broadcast %94 : vector<16x1xf32> to vector<16x256xf32>
    %96 = arith.mulf %85, %95 : vector<16x256xf32>
    %97 = arith.addf %71, %96 : vector<16x256xf32>
    %cst_26 = arith.constant 0xFF800000 : f32
    %98 = vector.broadcast %cst_26 : f32 to vector<16x256xf32>
    %99 = arith.select %83, %98, %73 : vector<16x256xi1>, vector<16x256xf32>
    %cst_27 = arith.constant dense<0xFF800000> : vector<16xf32>
    %100 = vector.multi_reduction <maximumf>, %99, %cst_27 [1] : vector<16x256xf32> to vector<16xf32>
    %101 = vector.shape_cast %100 : vector<16xf32> to vector<16x1xf32>
    %102 = vector.broadcast %101 : vector<16x1xf32> to vector<16x256xf32>
    %103 = arith.cmpf oeq, %99, %102 : vector<16x256xf32>
    %c256_i32_28 = arith.constant 256 : i32
    %104 = vector.broadcast %c256_i32_28 : i32 to vector<16x256xi32>
    %105 = arith.select %103, %11, %104 : vector<16x256xi1>, vector<16x256xi32>
    %cst_29 = arith.constant dense<2147483647> : vector<16xi32>
    %106 = vector.multi_reduction <minsi>, %105, %cst_29 [1] : vector<16x256xi32> to vector<16xi32>
    %107 = vector.shape_cast %106 : vector<16xi32> to vector<16x1xi32>
    %108 = vector.broadcast %107 : vector<16x1xi32> to vector<16x256xi32>
    %109 = arith.cmpi eq, %11, %108 : vector<16x256xi32>
    %110 = arith.extui %109 : vector<16x256xi1> to vector<16x256xi32>
    %111 = arith.sitofp %110 : vector<16x256xi32> to vector<16x256xf32>
    %cst_30 = arith.constant 0.000000e+00 : f32
    %112 = vector.broadcast %cst_30 : f32 to vector<16x1xf32>
    %113 = arith.maximumf %101, %112 : vector<16x1xf32>
    %114 = vector.broadcast %113 : vector<16x1xf32> to vector<16x256xf32>
    %115 = arith.mulf %111, %114 : vector<16x256xf32>
    %116 = arith.addf %90, %115 : vector<16x256xf32>
    %c0_i32_31 = arith.constant 0 : i32
    %117 = vector.broadcast %c0_i32_31 : i32 to vector<16x1xi32>
    %118 = arith.cmpi sgt, %107, %117 : vector<16x1xi32>
    %119 = arith.extui %118 : vector<16x1xi1> to vector<16x1xi32>
    %120 = arith.sitofp %119 : vector<16x1xi32> to vector<16x1xf32>
    %121 = vector.broadcast %120 : vector<16x1xf32> to vector<16x256xf32>
    %122 = arith.mulf %111, %121 : vector<16x256xf32>
    %123 = arith.addf %97, %122 : vector<16x256xf32>
    %124 = arith.truncf %116 : vector<16x256xf32> to vector<16x256xbf16>
    %cst_32 = arith.constant dense<0.000000e+00> : vector<16x128xf32>
    %125 = tpu.matmul %124, %4, %cst_32 {dimension_numbers = #tpu.dot_dimension_numbers<[1], [0], [0], [1], [0, 0, 1, 1], [], []>} : vector<16x256xbf16>, vector<256x128xbf16>, vector<16x128xf32> -> vector<16x128xf32>
    %126 = vector.broadcast %1 : vector<1x128xf32> to vector<16x128xf32>
    %127 = arith.addf %125, %126 : vector<16x128xf32>
    %c0_33 = arith.constant 0 : index
    %c0_34 = arith.constant 0 : index
    %128 = vector.load %arg6[%c0_33, %c0_34] : memref<16x128xf32, #tpu.memory_space<vmem>>, vector<16x128xf32>
    tpu.vector_store %arg6[%c0_33, %c0_34], %127 {strides = array<i32>} : memref<16x128xf32, #tpu.memory_space<vmem>>, vector<16x128xf32>,
    %129 = vector.broadcast %19 : vector<16x1xf32> to vector<16x256xf32>
    %130 = arith.mulf %123, %129 : vector<16x256xf32>
    %cst_35 = arith.constant dense<0.000000e+00> : vector<256xf32>
    %131 = vector.multi_reduction <add>, %130, %cst_35 [0] : vector<16x256xf32> to vector<256xf32>
    %132 = vector.shape_cast %131 : vector<256xf32> to vector<1x256xf32>
    %133 = tpu.iota {dimensions = array<i32: 0>} : vector<8x256xi32>
    %c0_i32_36 = arith.constant 0 : i32
    %134 = vector.broadcast %c0_i32_36 : i32 to vector<8x256xi32>
    %135 = arith.cmpi eq, %133, %134 : vector<8x256xi32>
    %cst_37 = arith.constant 0.000000e+00 : f32
    %136 = vector.shape_cast %132 : vector<1x256xf32> to vector<1x256xf32>
    %137 = vector.broadcast %136 : vector<1x256xf32> to vector<8x256xf32>
    %138 = vector.broadcast %cst_37 : f32 to vector<8x256xf32>
    %139 = arith.select %135, %137, %138 : vector<8x256xi1>, vector<8x256xf32>
    %c0_38 = arith.constant 0 : index
    %c0_39 = arith.constant 0 : index
    %140 = vector.load %arg7[%c0_38, %c0_39] : memref<8x256xf32, #tpu.memory_space<vmem>>, vector<8x256xf32>
    tpu.vector_store %arg7[%c0_38, %c0_39], %139 {strides = array<i32>} : memref<8x256xf32, #tpu.memory_space<vmem>>, vector<8x256xf32>,
    return
  }
  func.func @transform_0(%arg0: i32) -> (i32, i32) {
    %c0_i32 = arith.constant 0 : i32
    %c0_i32_0 = arith.constant 0 : i32
    return %arg0, %c0_i32 : i32, i32
  }
  func.func @transform_1(%arg0: i32) -> (i32, i32) {
    %c0_i32 = arith.constant 0 : i32
    %c0_i32_0 = arith.constant 0 : i32
    %c0_i32_1 = arith.constant 0 : i32
    return %c0_i32, %c0_i32_0 : i32, i32
  }
  func.func @transform_2(%arg0: i32) -> (i32, i32) {
    %c0_i32 = arith.constant 0 : i32
    %c0_i32_0 = arith.constant 0 : i32
    %c0_i32_1 = arith.constant 0 : i32
    return %c0_i32, %c0_i32_0 : i32, i32
  }
  func.func @transform_3(%arg0: i32) -> (i32, i32) {
    %c0_i32 = arith.constant 0 : i32
    %c0_i32_0 = arith.constant 0 : i32
    %c0_i32_1 = arith.constant 0 : i32
    return %c0_i32, %c0_i32_0 : i32, i32
  }
  func.func @transform_4(%arg0: i32) -> (i32, i32) {
    %c0_i32 = arith.constant 0 : i32
    %c0_i32_0 = arith.constant 0 : i32
    %c0_i32_1 = arith.constant 0 : i32
    return %c0_i32, %c0_i32_0 : i32, i32
  }
  func.func @transform_5(%arg0: i32) -> (i32, i32) {
    %c0_i32 = arith.constant 0 : i32
    %c0_i32_0 = arith.constant 0 : i32
    return %arg0, %c0_i32 : i32, i32
  }
  func.func @transform_6(%arg0: i32) -> (i32, i32) {
    %c0_i32 = arith.constant 0 : i32
    %c0_i32_0 = arith.constant 0 : i32
    return %arg0, %c0_i32 : i32, i32
  }
}

</mosaic_0001>

<bundles_post_ra>
// kernel: tpu_custom_call.1
= control target key start
LH: loop header
LB: loop body
LE: loop exit
PB: predicated region body
PF: predicated region fallthrough
CT: control target
= control target key end

     0   :  { %12 = vsyncpa [#allocation3], 0  ;;  %s2094_s0 = inlined_call_operand.hbm [shape: f32[48,128], index: 0, kind: input, shape index: {}]   ;;  %s2095_s1 = inlined_call_operand.vmem [shape: f32[1,128], index: 1, kind: input, shape index: {}]   ;;  %s2096_s2 = inlined_call_operand.vmem [shape: f32[1,256], index: 2, kind: input, shape index: {}]   ;;  %s2097_s3 = inlined_call_operand.hbm [shape: bf16[128,256], index: 3, kind: input, shape index: {}]   ;;  %s2098_s4 = inlined_call_operand.hbm [shape: bf16[256,128], index: 4, kind: input, shape index: {}]   ;;  %s2099_s5 = inlined_call_operand.hbm [shape: f32[48,128], index: 5, kind: output, shape index: {0}]   ;;  %s2100_s6 = inlined_call_operand.hbm [shape: f32[24,256], index: 6, kind: output, shape index: {1}]  }
   0x1   :  { %14 = vsyncpa [#allocation3 + $0x1], 0 }
   0x2   :  { %15 = vsyncpa [#allocation6], 0 }
   0x3   :  { %16 = vsyncpa [#allocation4], 0 }
   0x4   :  { %18 = vsyncpa [#allocation4 + $0x1], 0 }
   0x5   :  { %19 = vsyncpa [#allocation10], 0 }
   0x6   :  { %21 = vsyncpa [#allocation10 + $0x1], 0  ;;  %s1640_s21 = smov 0   ;;  %s1642_s22 = smov 0  }
   0x7   :  { %s1644_s23 = smov 0   ;;  %s1646_s24 = smov 0  }
   0x8 LB: > { %s1661_s25 = sadd.s32 4294967295, %s1590_s24   ;;  %s1185_s26 = sadd.s32 4294967294, %s1590_s24   ;;  %s1590_s24 = sphi %s1646_s24, %s2126_s24   ;;  %s1586_s23 = sphi %s1644_s23, %s2125_s23   ;;  %s1582_s22 = sphi %s1642_s22, %s2124_s22   ;;  %s1578_s21 = sphi %s1640_s21, %s2123_s21  }
   0x9   : > { %p47_p0 = scmp.ne.s32.totalorder %s1582_s22, %s1578_s21  ;;  %p2101_p1 = scmp.eq.s32.totalorder %s1661_s25, 0 }
   0xa   : > { %p155_p2 = scmp.eq.s32.totalorder %s1661_s25, 2  ;;  %p161_p3 = scmp.eq.s32.totalorder %s1185_s26, 2 }
   0xb   : > { %p1670_p4 = por %p2101_p1, %p47_p0  ;;  %p1186_p5 = scmp.ge.s32.totalorder %s1590_s24, 1 }
   0xc   : > { %p1675_p6 = por %p161_p3, %p47_p0  ;;  %p194_p7 = scmp.lt.s32.totalorder %s1590_s24, 4 }
   0xd   : > { %s2108_s27 = scalar_select %p1670_p4, 1, 0 }
   0xe   : > { %s2109_s28 = scalar_select %p1675_p6, 1, 0 }
   0xf   : > { %p1680_p8 = pnand %p1186_p5, %p194_p7  ;;  %s1592_s30 = smov [#allocation5]  }
  0x10   : > { %s212_s7 = sshll.u32 %s1592_s30, 4  ;;  %s1593_s9 = smov [#allocation7]   ;;  %s213_s7 = int_to_ptr.vmem [resolvable:$true] %s212_s7 }
  0x11   : > { %s2110_s29 = scalar_select %p1680_p8, 1, 0 }
  0x12   : > { %p1306_p9 = pneg %p1680_p8  ;;  %s225_s10 = sshll.u32 %s1593_s9, 4  ;;  %s226_s10 = int_to_ptr.vmem [resolvable:$true] %s225_s10 }
  0x13   : > { %s1423_s11 = scalar_lea.vmem %s213_s7, 2048  ;;  %p1431_p3 = scmp.lt.s32.totalorder %s213_s7, %s213_s7 }
  0x14   : > { %p1688_p10 = pnand %p1306_p9, %p2101_p1  ;;  %p1424_p12 = scmp.ne.s32.totalorder %s213_s7, %s1423_s11 }
  0x15   : > { %p1432_p5 = scmp.lt.s32.totalorder %s1423_s11, %s1423_s11 }
  0x16   : > { %p1414_p11 = pneg %p1688_p10 }
  0x17   : > { %p1433_p7 = por %p1432_p5, %p1431_p3 }
  0x18   : > { %p1426_p13 = pnand %p1424_p12, %p1414_p11 }
  0x1a   : > { %p1427_p0 = pneg %p1426_p13 }
  0x1c   : > { %p1434_p9 = pnand %p1433_p7, %p1427_p0 }
  0x1e   : > { %1437 = shalt.err (!%p1434_p9)
}
  0x1f   : > { %s2102_s12 = smov 128   ;;  %s2103_s13 = smov 8  }
  0x20   : > { %1309 = dma.hbm_to_vmem [thread:$0]  (!%p1688_p10), %s2097_s3, 2048, %s213_s7, [#allocation6], %s2102_s12, %s2102_s12, %s2103_s13  }
  0x21   : > { %s1449_s16 = scalar_lea.vmem %s226_s10, 2048  ;;  %p1457_p0 = scmp.lt.s32.totalorder %s226_s10, %s226_s10 }
  0x22   : > { %p1450_p12 = scmp.ne.s32.totalorder %s226_s10, %s1449_s16  ;;  %p1458_p5 = scmp.lt.s32.totalorder %s1449_s16, %s1449_s16 }
  0x24   : > { %p1452_p13 = pnand %p1450_p12, %p1414_p11  ;;  %p1459_p7 = por %p1458_p5, %p1457_p0 }
  0x26   : > { %p1453_p3 = pneg %p1452_p13 }
  0x28   : > { %p1460_p9 = pnand %p1459_p7, %p1453_p3 }
  0x2a   : > { %1463 = shalt.err (!%p1460_p9)
}
  0x2b   : > { %s1596_s17 = smov 64   ;;  %s1597_s18 = smov 4  }
  0x2c   : > { %1312 = dma.hbm_to_vmem [thread:$0]  (!%p1688_p10), %s2098_s4, 2048, %s226_s10, [#allocation6], %s1596_s17, %s1596_s17, %s1597_s18  }
  0x2d   : > { %s1714_s26 = sadd.s32 1, %s1590_s24   ;;  %s34_s7 = sadd.s32 1, %s1586_s23 }
  0x2e   : > { %s31_s30 = ssub.s32 %s1590_s24, %s1714_s26  ;;  %p41_p12 = scmp.ne.s32.totalorder %s1586_s23, %s1582_s22 }
  0x2f   : > { %p32_p11 = scmp.eq.s32.totalorder %s31_s30, 0  ;;  %p42_p13 = scmp.eq.s32.totalorder %s1590_s24, 0 }
  0x30   : > { %p1727_p0 = por %p155_p2, %p41_p12  ;;  %p1326_p5 = scmp.lt.s32.totalorder %s1590_s24, 3 }
  0x31   : > { %s1723_s9 = scalar_select %p32_p11, %s1586_s23, %s34_s7  }
  0x32   : > { %p43_p3 = por %p42_p13, %p41_p12  ;;  %s239_s8 = sand.u32 1, %s1586_s23  }
  0x33   : > { %s2112_s11 = scalar_select %p1727_p0, 1, 0 }
  0x34   : > { %s1190_s14 = sshll.u32 %s239_s8, 4  ;;  %s1267_s10 = sshll.u32 %s1590_s24, 8 }
  0x35   : > { %s1737_s17 = scalar_lea.hbm %s2094_s0, %s1267_s10  ;;  %s243_s18 = scalar_lea.vmem [#allocation2], %s1190_s14 }
  0x36   : > { %s250_s19 = sshll.u32 %s243_s18, 4  ;;  %p1741_p2 = pnand %p1326_p5, %p43_p3  ;;  %s1739_s19 = int_to_ptr.vmem [resolvable:$true] %s250_s19 }
  0x37   : > { %s1745_s30 = scalar_lea.sflag [#allocation3], %s239_s8  ;;  %s1464_s7 = scalar_lea.hbm %s1737_s17, 256 }
  0x38   : > { %p1465_p10 = scmp.ne.s32.totalorder %s1737_s17, %s1464_s7  ;;  %p1466_p7 = pneg %p1741_p2 }
  0x39   : > { %s1469_s14 = scalar_lea.hbm %s2094_s0, 768  ;;  %p1470_p12 = scmp.lt.s32.totalorder %s1737_s17, %s2094_s0 }
  0x3a   : > { %p1467_p9 = pnand %p1466_p7, %p1465_p10  ;;  %p1471_p13 = scmp.lt.s32.totalorder %s1469_s14, %s1464_s7 }
  0x3c   : > { %p1468_p11 = pneg %p1467_p9  ;;  %p1472_p3 = por %p1471_p13, %p1470_p12 }
  0x3e   : > { %p1473_p5 = pnand %p1472_p3, %p1468_p11 }
  0x40   : > { %1476 = shalt.err (!%p1473_p5)
}
  0x41   : > { %s1477_s8 = scalar_lea.vmem %s1739_s19, 256  ;;  %s1598_s12 = smov [#allocation2]  }
  0x42   : > { %p1478_p1 = scmp.ne.s32.totalorder %s1739_s19, %s1477_s8  ;;  %s1482_s13 = sshll.u32 %s1598_s12, 4  ;;  %s1483_s13 = int_to_ptr.vmem [resolvable:$false] %s1482_s13 }
  0x43   : > { %s1484_s10 = scalar_lea.vmem %s1483_s13, 512  ;;  %p1485_p9 = scmp.lt.s32.totalorder %s1739_s19, %s1483_s13 }
  0x44   : > { %p1480_p6 = pnand %p1478_p1, %p1466_p7  ;;  %p1486_p0 = scmp.lt.s32.totalorder %s1484_s10, %s1477_s8 }
  0x46   : > { %p1481_p10 = pneg %p1480_p6  ;;  %p1487_p4 = por %p1486_p0, %p1485_p9 }
  0x48   : > { %p1488_p8 = pnand %p1487_p4, %p1481_p10 }
  0x4a   : > { %1491 = shalt.err (!%p1488_p8)
}
  0x4b   : > { %s2114_s7 = smov 8   ;;  %s2115_s15 = smov 128  }
  0x4c   : > { %1316 = dma.hbm_to_vmem [thread:$0]  (!%p1741_p2), %s1737_s17, 256, %s1739_s19, %s1745_s30, %s2115_s15, %s2115_s15, %s2114_s7  }
  0x4d   : > { %p2116_p1 = scmp.ne.s32.totalorder %s2110_s29, 0 }
  0x4e   : > { %s1772_s12 = sand.u32 (!%p2116_p1), 1, %s1582_s22   ;;  %p2117_p4 = scmp.ne.s32.totalorder (!%p2116_p1), %s2108_s27, 0 }
  0x4f   : > { %262 = sbr.rel (%p2116_p1) target bundleno = 2277 (0x8e5), region = 40  ;;  %s1775_s13 = sshll.u32 (!%p2116_p1), %s1772_s12, 4 }
  0x50   : > { %s265_s20 = scalar_lea.sflag (!%p2116_p1), [#allocation3], %s1772_s12  ;;  %s268_s14 = scalar_lea.vmem (!%p2116_p1), [#allocation2], %s1775_s13 }
  0x54   : > { %1561 = dma.done.wait (%p2117_p4), %s265_s20, 256  }
  0x55   : > { %1563 = vsyncadd (%p2117_p4), %s265_s20, 4294967040  ;;  %p2118_p6 = scmp.eq.s32.totalorder %s1661_s25, 0 }
  0x57   : > { %1565 = dma.done.wait (%p2118_p6), [#allocation6], 4096   ;;  %p2119_p8 = pmov %p2118_p6 }
  0x58   : > { %v1599_v0 = vmov 0   ;;  %v1372_v1 = vld [vmem:[#allocation5 + $0x74] ss:$8 sps:$4 sm:$0xff]   ;;  %v1374_v2 = vld [vmem:[#allocation5 + $0x70] ss:$8 sps:$4 sm:$0xff]   ;;  %v375_v23 = vlaneseq  ;;  %s1216_s30 = sshll.u32 %s1661_s25, 4 }
  0x59   : > { %1567 = vsyncadd (%p2119_p8), [#allocation6], 4294963200  ;;  %497 = vmatprep.mubr.bf16.mxu0 %v1599_v0  ;;  %465 = vmatprep.subr.bf16.mxu0 %v1372_v1  ;;  %v1375_v3 = vld [vmem:[#allocation5 + $0x64] ss:$8 sps:$4 sm:$0xff]   ;;  %v1377_v4 = vld [vmem:[#allocation5 + $0x60] ss:$8 sps:$4 sm:$0xff]  }
  0x5a   : > { %466 = vmatpush1.bf16.msra.mxu0 %v1374_v2  ;;  %v1378_v5 = vld [vmem:[#allocation5 + $0x54] ss:$8 sps:$4 sm:$0xff]   ;;  %v1380_v6 = vld [vmem:[#allocation5 + $0x50] ss:$8 sps:$4 sm:$0xff]   ;;  %v1381_v7 = vld [vmem:[#allocation5 + $0x44] ss:$8 sps:$4 sm:$0xff]  }
  0x5b   : > { %467 = vmatprep.subr.bf16.mxu0 %v1375_v3  ;;  %v1383_v8 = vld [vmem:[#allocation5 + $0x40] ss:$8 sps:$4 sm:$0xff]   ;;  %v1384_v9 = vld [vmem:[#allocation5 + $0x34] ss:$8 sps:$4 sm:$0xff]   ;;  %v1386_v10 = vld [vmem:[#allocation5 + $0x30] ss:$8 sps:$4 sm:$0xff]  }
  0x5c   : > { %v1387_v11 = vld [vmem:[#allocation5 + $0x24] ss:$8 sps:$4 sm:$0xff]   ;;  %v1389_v12 = vld [vmem:[#allocation5 + $0x20] ss:$8 sps:$4 sm:$0xff]   ;;  %v1390_v13 = vld [vmem:[#allocation5 + $0x14] ss:$8 sps:$4 sm:$0xff]  }
  0x5d   : > { %v1392_v14 = vld [vmem:[#allocation5 + $0x10] ss:$8 sps:$4 sm:$0xff]   ;;  %v1794_v17 = vld [vmem:[%s2095_s1] ss:$0 sm:$0xff]  ;;  %v1393_v18 = vld [vmem:[#allocation5 + $0x4] ss:$8 sps:$4 sm:$0xff]  }
  0x5e   : > { %468 = vmatpush1.bf16.msra.mxu0 %v1377_v4  ;;  %v313_v15 = vld [vmem:[%s268_s14] sm:$0xff]  ;;  %v314_v16 = vld [vmem:[%s268_s14 + $0x8] sm:$0xff]  ;;  %v1798_v24 = vshrl.u32 %v375_v23, 7  ;;  %v1811_v40 = vand.u32 127, %v375_v23  ;;  %s309_s16 = scalar_lea.vmem [#allocation9], %s1775_s13  ;;  %s2107_s18 = sshll.u32 %s1661_s25, 8 }
  0x5f   : > { %469 = vmatprep.subr.bf16.mxu0 %v1378_v5  ;;  %v371_v19 = vsub.f32 %v313_v15, %v1794_v17  ;;  %v372_v20 = vsub.f32 %v314_v16, %v1794_v17  ;;  %v1395_v21 = vld [vmem:[#allocation5] ss:$8 sps:$4 sm:$0xff]   ;;  %s1062_s7 = scalar_lea.hbm %s2100_s6, %s2107_s18  ;;  %s1064_s15 = sshll.u32 %s309_s16, 4  ;;  %s1065_s15 = int_to_ptr.vmem [resolvable:$true] %s1064_s15 }
  0x60   : > { %v377_v25 = vsub.s32 0, %v1798_v24  ;;  %v381_v26 = vsub.s32 1, %v1798_v24  ;;  %v316_v27 = vld [vmem:[%s2096_s2] sm:$0x3]  ;;  %v1814_v41 = vadd.s32 128, %v1811_v40  ;;  %s1034_s20 = scalar_lea.sflag [#allocation10], %s1772_s12 }
  0x61   : > { %v373_v22 = vpack.c.bf16 %v372_v20, %v371_v19  ;;  %s1492_s14 = scalar_lea.vmem %s1065_s15, 256  ;;  %p2120_p2 = scmp.ne.s32.totalorder %s2112_s11, 0 }
  0x62   : > { %470 = vmatpush1.bf16.msra.mxu0 %v1380_v6  ;;  %v378_v28 = vrot.slane %v316_v27, %v377_v25  ;;  %v382_v29 = vrot.slane %v316_v27, %v381_v26  ;;  %p1493_p0 = scmp.ne.s32.totalorder %s1065_s15, %s1492_s14  ;;  %s1601_s27 = smov [#allocation9]  }
  0x63   : > { %471 = vmatprep.subr.bf16.mxu0 %v1381_v7  ;;  %s1496_s29 = sshll.u32 %s1601_s27, 4  ;;  %s1497_s29 = int_to_ptr.vmem [resolvable:$false] %s1496_s29 }
  0x64   : > { %p1494_p7 = pnand %p1493_p0, %p2120_p2  ;;  %s1498_s17 = scalar_lea.vmem %s1497_s29, 512 }
  0x65   : > { %p1499_p12 = scmp.lt.s32.totalorder %s1065_s15, %s1497_s29  ;;  %p1500_p13 = scmp.lt.s32.totalorder %s1498_s17, %s1492_s14 }
  0x66   : > { %472 = vmatpush1.bf16.msra.mxu0 %v1383_v8  ;;  %v1600_v8 = vmov 0.0   ;;  %p1495_p11 = pneg %p1494_p7 }
  0x67   : > { %473 = vmatprep.subr.bf16.mxu0 %v1384_v9  ;;  %p1501_p3 = por %p1500_p13, %p1499_p12 }
  0x69   : > { %p1502_p5 = pnand %p1501_p3, %p1495_p11 }
  0x6a   : > { %474 = vmatpush1.bf16.msra.mxu0 %v1386_v10 }
  0x6b   : > { %475 = vmatprep.subr.bf16.mxu0 %v1387_v11 }
  0x6e   : > { %476 = vmatpush1.bf16.msra.mxu0 %v1389_v12 }
  0x6f   : > { %477 = vmatprep.subr.bf16.mxu0 %v1390_v13 }
  0x72   : > { %478 = vmatpush1.bf16.msra.mxu0 %v1392_v14 }
  0x73   : > { %479 = vmatprep.subr.bf16.mxu0 %v1393_v18 }
  0x76   : > { %480 = vmatpush1.bf16.msra.mxu0 %v1395_v21 }
  0x79   : > { %498 = vmatmul.mubr.bf16.vlgmr.msra.gmra.mxu0 %v373_v22 }
 0x139   : > { %v499_v30 = vpop.f32.mrf.mxu0 }
 0x13a   : > { %v500_v32 = vadd.f32 %v499_v30, %v378_v28 }
 0x13b   : > { %v501_v31 = vpop.f32.mrf.mxu0 }
 0x13c   : > { %v502_v33 = vadd.f32 %v501_v31, %v382_v29 }
 0x13d   : > { %v503_v34 = vpop.f32.mrf.mxu0 }
 0x13e   : > { %v524_v35 = vmax.f32 %v500_v32, %v502_v33  ;;  %v1805_v37 = vadd.f32 %v503_v34, %v378_v28 }
 0x13f   : > { %v505_v36 = vpop.f32.mrf.mxu0 }
 0x140   : > { %v1807_v38 = vadd.f32 %v505_v36, %v382_v29  ;;  %525 = vmax.xlane.f32.xlu0 %v524_v35 }
 0x142   : > { %v527_v39 = vmax.f32 %v1805_v37, %v1807_v38 }
 0x144   : > { %528 = vmax.xlane.f32.xlu0 %v527_v39 }
 0x1c9   : > { %v526_v42 = vpop.xlane.xlu0 %525 }
 0x1ca   : > { %vm530_vm0 = vcmp.eq.f32.partialorder %v500_v32, %v526_v42  ;;  %vm531_vm1 = vcmp.eq.f32.partialorder %v502_v33, %v526_v42  ;;  %v582_v4 = vmax.f32 %v526_v42, 0.0 }
 0x1cb   : > { %v534_v43 = vsel %vm530_vm0, %v1811_v40, 256  ;;  %v535_v44 = vsel %vm531_vm1, %v1814_v41, 256 }
 0x1cc   : > { %vm538_vm2 = vcmp.lt.s32.totalorder %v534_v43, %v535_v44 }
 0x1cd   : > { %v1818_v45 = vpop.xlane.xlu0 %528  ;;  %v539_v46 = vsel %vm538_vm2, %v534_v43, %v535_v44 }
 0x1ce   : > { %vm532_vm3 = vcmp.eq.f32.partialorder %v1805_v37, %v1818_v45  ;;  %vm533_vm4 = vcmp.eq.f32.partialorder %v1807_v38, %v1818_v45  ;;  %v541_v47 = vshra.s32 %v539_v46, 16  ;;  %v540_v54 = vand.u32 65535, %v539_v46 }
 0x1cf   : > { %v536_v48 = vsel %vm532_vm3, %v1811_v40, 256  ;;  %v537_v49 = vsel %vm533_vm4, %v1814_v41, 256 }
 0x1d0   : > { %v543_v50 = vcvt.s32.f32 %v541_v47  ;;  %vm554_vm5 = vcmp.lt.s32.totalorder %v536_v48, %v537_v49  ;;  %v542_v56 = vcvt.s32.f32 %v540_v54 }
 0x1d1   : > { %v555_v51 = vsel %vm554_vm5, %v536_v48, %v537_v49 }
 0x1d2   : > { %544 = vmin.xlane.f32.xlu1 %v543_v50  ;;  %v557_v52 = vshra.s32 %v555_v51, 16  ;;  %v556_v57 = vand.u32 65535, %v555_v51 }
 0x1d4   : > { %v559_v53 = vcvt.s32.f32 %v557_v52  ;;  %v558_v60 = vcvt.s32.f32 %v556_v57 }
 0x1d6   : > { %560 = vmin.xlane.f32.xlu1 %v559_v53 }
 0x25b   : > { %v545_v55 = vpop.xlane.xlu1 %544 }
 0x25c   : > { %vm546_vm6 = vcmp.eq.f32.partialorder %v543_v50, %v545_v55  ;;  %v551_v62 = vcvt.f32.s32 %v545_v55 }
 0x25d   : > { %v547_v58 = vsel %vm546_vm6, %v542_v56, inf }
 0x25e   : > { %548 = vmin.xlane.f32.xlu0 %v547_v58  ;;  %v552_v1 = vshll.u32 %v551_v62, 16 }
 0x25f   : > { %v561_v59 = vpop.xlane.xlu1 %560 }
 0x260   : > { %vm562_vm7 = vcmp.eq.f32.partialorder %v559_v53, %v561_v59  ;;  %v567_v63 = vcvt.f32.s32 %v561_v59  ;;  %v583_v59 = vmax.f32 %v1818_v45, 0.0 }
 0x261   : > { %v563_v61 = vsel %vm562_vm7, %v558_v60, inf }
 0x262   : > { %564 = vmin.xlane.f32.xlu1 %v563_v61  ;;  %v568_v5 = vshll.u32 %v567_v63, 16 }
 0x2e7   : > { %v549_v0 = vpop.xlane.xlu0 %548 }
 0x2e8   : > { %v550_v2 = vcvt.f32.s32 %v549_v0 }
 0x2ea   : > { %v553_v3 = vadd.s32 %v552_v1, %v550_v2 }
 0x2eb   : > { %v565_v6 = vpop.xlane.xlu1 %564 }
 0x2ec   : > { %vm592_vm8 = vcmp.gt.s32.totalorder %v553_v3, 0  ;;  %v566_v7 = vcvt.f32.s32 %v565_v6  ;;  %vm570_vm9 = vcmp.eq.s32.totalorder %v1811_v40, %v553_v3  ;;  %vm571_vm10 = vcmp.eq.s32.totalorder %v1814_v41, %v553_v3 }
 0x2ed   : > { %v1220_v9 = vsel %vm571_vm10, 1.0, %v1600_v8  ;;  %v1223_v10 = vsel %vm592_vm8, 1.0, %v1600_v8  ;;  %v1830_v11 = vsel %vm570_vm9, -inf, %v500_v32  ;;  %v1832_v12 = vsel %vm571_vm10, -inf, %v502_v33 }
 0x2ee   : > { %v569_v13 = vadd.s32 %v568_v5, %v566_v7  ;;  %v1834_v14 = vmul.f32 %v1220_v9, %v582_v4  ;;  %v1836_v15 = vmul.f32 %v1223_v10, %v1220_v9  ;;  %v610_v16 = vmax.f32 %v1830_v11, %v1832_v12 }
 0x2ef   : > { %v1219_v18 = vsel %vm570_vm9, 1.0, %v1600_v8 }
 0x2f0   : > { %vm593_vm11 = vcmp.gt.s32.totalorder %v569_v13, 0  ;;  %611 = vmax.xlane.f32.xlu0 %v610_v16  ;;  %v1841_v19 = vmul.f32 %v1219_v18, %v582_v4  ;;  %v1843_v20 = vmul.f32 %v1223_v10, %v1219_v18  ;;  %vm572_vm12 = vcmp.eq.s32.totalorder %v1811_v40, %v569_v13 }
 0x2f1   : > { %vm573_vm13 = vcmp.eq.s32.totalorder %v1814_v41, %v569_v13  ;;  %v1224_v21 = vsel %vm593_vm11, 1.0, %v1600_v8  ;;  %v1849_v22 = vsel %vm572_vm12, -inf, %v1805_v37  ;;  %v1852_v23 = vsel %vm572_vm12, 1.0, %v1600_v8 }
 0x2f2   : > { %v1855_v25 = vsel %vm573_vm13, 1.0, %v1600_v8  ;;  %v1858_v26 = vsel %vm573_vm13, -inf, %v1807_v38  ;;  %v1861_v27 = vmul.f32 %v1224_v21, %v1852_v23  ;;  %v586_v13 = vmul.f32 %v1852_v23, %v583_v59 }
 0x2f3   : > { %v1864_v28 = vmul.f32 %v1224_v21, %v1855_v25  ;;  %v613_v29 = vmax.f32 %v1849_v22, %v1858_v26 }
 0x2f5   : > { %614 = vmax.xlane.f32.xlu1 %v613_v29 }
 0x379   : > { %v612_v30 = vpop.xlane.xlu0 %611 }
 0x37a   : > { %vm616_vm14 = vcmp.eq.f32.partialorder %v1830_v11, %v612_v30  ;;  %vm617_vm15 = vcmp.eq.f32.partialorder %v1832_v12, %v612_v30  ;;  %v668_v60 = vmax.f32 %v612_v30, 0.0 }
 0x37b   : > { %v620_v31 = vsel %vm616_vm14, %v1811_v40, 256  ;;  %v621_v32 = vsel %vm617_vm15, %v1814_v41, 256 }
 0x37c   : > { %vm624_vm0 = vcmp.lt.s32.totalorder %v620_v31, %v621_v32 }
 0x37d   : > { %v625_v33 = vsel %vm624_vm0, %v620_v31, %v621_v32 }
 0x37e   : > { %v1872_v34 = vpop.xlane.xlu1 %614  ;;  %v627_v35 = vshra.s32 %v625_v33, 16  ;;  %v626_v44 = vand.u32 65535, %v625_v33 }
 0x37f   : > { %vm618_vm1 = vcmp.eq.f32.partialorder %v1849_v22, %v1872_v34  ;;  %vm619_vm2 = vcmp.eq.f32.partialorder %v1858_v26, %v1872_v34  ;;  %v669_v16 = vmax.f32 %v1872_v34, 0.0 }
 0x380   : > { %v622_v36 = vsel %vm618_vm1, %v1811_v40, 256  ;;  %v623_v37 = vsel %vm619_vm2, %v1814_v41, 256  ;;  %v629_v38 = vcvt.s32.f32 %v627_v35  ;;  %v628_v47 = vcvt.s32.f32 %v626_v44 }
 0x381   : > { %vm640_vm3 = vcmp.lt.s32.totalorder %v622_v36, %v623_v37 }
 0x382   : > { %630 = vmin.xlane.f32.xlu0 %v629_v38  ;;  %v641_v39 = vsel %vm640_vm3, %v622_v36, %v623_v37 }
 0x383   : > { %v643_v42 = vshra.s32 %v641_v39, 16  ;;  %v642_v48 = vand.u32 65535, %v641_v39 }
 0x385   : > { %v645_v43 = vcvt.s32.f32 %v643_v42  ;;  %v644_v51 = vcvt.s32.f32 %v642_v48 }
 0x387   : > { %646 = vmin.xlane.f32.xlu1 %v645_v43 }
 0x40b   : > { %v631_v46 = vpop.xlane.xlu0 %630 }
 0x40c   : > { %vm632_vm4 = vcmp.eq.f32.partialorder %v629_v38, %v631_v46  ;;  %v637_v53 = vcvt.f32.s32 %v631_v46 }
 0x40d   : > { %v633_v49 = vsel %vm632_vm4, %v628_v47, inf }
 0x40e   : > { %634 = vmin.xlane.f32.xlu0 %v633_v49  ;;  %v638_v55 = vshll.u32 %v637_v53, 16 }
 0x410   : > { %v647_v50 = vpop.xlane.xlu1 %646 }
 0x411   : > { %vm648_vm5 = vcmp.eq.f32.partialorder %v645_v43, %v647_v50  ;;  %v653_v56 = vcvt.f32.s32 %v647_v50 }
 0x412   : > { %v649_v52 = vsel %vm648_vm5, %v644_v51, inf }
 0x413   : > { %650 = vmin.xlane.f32.xlu1 %v649_v52  ;;  %v654_v61 = vshll.u32 %v653_v56, 16 }
 0x497   : > { %v635_v54 = vpop.xlane.xlu0 %634 }
 0x498   : > { %v636_v57 = vcvt.f32.s32 %v635_v54 }
 0x49a   : > { %v639_v58 = vadd.s32 %v638_v55, %v636_v57 }
 0x49c   : > { %vm678_vm6 = vcmp.gt.s32.totalorder %v639_v58, 0  ;;  %v651_v62 = vpop.xlane.xlu1 %650  ;;  %vm656_vm7 = vcmp.eq.s32.totalorder %v1811_v40, %v639_v58  ;;  %vm657_vm8 = vcmp.eq.s32.totalorder %v1814_v41, %v639_v58 }
 0x49d   : > { %v652_v63 = vcvt.f32.s32 %v651_v62  ;;  %v1226_v0 = vsel %vm657_vm8, 1.0, %v1600_v8  ;;  %v1229_v1 = vsel %vm678_vm6, 1.0, %v1600_v8  ;;  %v1886_v2 = vsel %vm656_vm7, -inf, %v1830_v11 }
 0x49e   : > { %v671_v3 = vmul.f32 %v1226_v0, %v668_v60  ;;  %v685_v4 = vmul.f32 %v1229_v1, %v1226_v0  ;;  %v1889_v45 = vsel %vm657_vm8, -inf, %v1832_v12  ;;  %v1225_v5 = vsel %vm656_vm7, 1.0, %v1600_v8 }
 0x49f   : > { %v655_v6 = vadd.s32 %v654_v61, %v652_v63  ;;  %v696_v7 = vmax.f32 %v1886_v2, %v1889_v45  ;;  %v670_v9 = vmul.f32 %v1225_v5, %v668_v60  ;;  %v684_v10 = vmul.f32 %v1229_v1, %v1225_v5 }
 0x4a0   : > { %v1897_v11 = vadd.f32 %v685_v4, %v1836_v15  ;;  %v1900_v18 = vadd.f32 %v671_v3, %v1834_v14 }
 0x4a1   : > { %vm679_vm9 = vcmp.gt.s32.totalorder %v655_v6, 0  ;;  %697 = vmax.xlane.f32.xlu0 %v696_v7  ;;  %v1903_v12 = vadd.f32 %v670_v9, %v1841_v19  ;;  %v1906_v21 = vadd.f32 %v684_v10, %v1843_v20  ;;  %vm658_vm10 = vcmp.eq.s32.totalorder %v1811_v40, %v655_v6 }
 0x4a2   : > { %vm659_vm11 = vcmp.eq.s32.totalorder %v1814_v41, %v655_v6  ;;  %v1230_v23 = vsel %vm679_vm9, 1.0, %v1600_v8  ;;  %v1912_v15 = vsel %vm658_vm10, -inf, %v1849_v22  ;;  %v1227_v14 = vsel %vm658_vm10, 1.0, %v1600_v8 }
 0x4a3   : > { %v1228_v29 = vsel %vm659_vm11, 1.0, %v1600_v8  ;;  %v1917_v30 = vsel %vm659_vm11, -inf, %v1858_v26  ;;  %v672_v19 = vmul.f32 %v1227_v14, %v669_v16  ;;  %v686_v31 = vmul.f32 %v1230_v23, %v1227_v14 }
 0x4a4   : > { %v587_v20 = vmul.f32 %v1855_v25, %v583_v59  ;;  %v673_v32 = vmul.f32 %v1228_v29, %v669_v16  ;;  %v687_v33 = vmul.f32 %v1230_v23, %v1228_v29  ;;  %v699_v34 = vmax.f32 %v1912_v15, %v1917_v30 }
 0x4a5   : > { %v1922_v35 = vadd.f32 %v672_v19, %v586_v13  ;;  %v1925_v22 = vadd.f32 %v686_v31, %v1861_v27 }
 0x4a6   : > { %v1928_v36 = vadd.f32 %v687_v33, %v1864_v28  ;;  %700 = vmax.xlane.f32.xlu1 %v699_v34  ;;  %v1930_v26 = vadd.f32 %v673_v32, %v587_v20 }
 0x52a   : > { %v698_v37 = vpop.xlane.xlu0 %697 }
 0x52b   : > { %vm702_vm12 = vcmp.eq.f32.partialorder %v1886_v2, %v698_v37  ;;  %vm703_vm13 = vcmp.eq.f32.partialorder %v1889_v45, %v698_v37  ;;  %v754_v63 = vmax.f32 %v698_v37, 0.0 }
 0x52c   : > { %v706_v25 = vsel %vm702_vm12, %v1811_v40, 256  ;;  %v707_v38 = vsel %vm703_vm13, %v1814_v41, 256 }
 0x52d   : > { %vm710_vm14 = vcmp.lt.s32.totalorder %v706_v25, %v707_v38 }
 0x52e   : > { %v711_v39 = vsel %vm710_vm14, %v706_v25, %v707_v38 }
 0x52f   : > { %v1936_v42 = vpop.xlane.xlu1 %700  ;;  %v713_v27 = vshra.s32 %v711_v39, 16  ;;  %v712_v49 = vand.u32 65535, %v711_v39 }
 0x530   : > { %vm704_vm15 = vcmp.eq.f32.partialorder %v1912_v15, %v1936_v42  ;;  %vm705_vm0 = vcmp.eq.f32.partialorder %v1917_v30, %v1936_v42  ;;  %v755_v19 = vmax.f32 %v1936_v42, 0.0 }
 0x531   : > { %v708_v28 = vsel %vm704_vm15, %v1811_v40, 256  ;;  %v709_v43 = vsel %vm705_vm0, %v1814_v41, 256  ;;  %v715_v44 = vcvt.s32.f32 %v713_v27  ;;  %v714_v51 = vcvt.s32.f32 %v712_v49 }
 0x532   : > { %vm726_vm1 = vcmp.lt.s32.totalorder %v708_v28, %v709_v43 }
 0x533   : > { %716 = vmin.xlane.f32.xlu0 %v715_v44  ;;  %v727_v46 = vsel %vm726_vm1, %v708_v28, %v709_v43 }
 0x534   : > { %v729_v47 = vshra.s32 %v727_v46, 16  ;;  %v728_v52 = vand.u32 65535, %v727_v46 }
 0x536   : > { %v731_v48 = vcvt.s32.f32 %v729_v47  ;;  %v730_v55 = vcvt.s32.f32 %v728_v52  ;;  %v1398_v52 = vld [vmem:[#allocation7 + $0x70] sm:$0xff]  }
 0x538   : > { %732 = vmin.xlane.f32.xlu1 %v731_v48 }
 0x5bc   : > { %v717_v50 = vpop.xlane.xlu0 %716 }
 0x5bd   : > { %vm718_vm2 = vcmp.eq.f32.partialorder %v715_v44, %v717_v50  ;;  %v723_v57 = vcvt.f32.s32 %v717_v50  ;;  %v1396_v50 = vld [vmem:[#allocation7 + $0x78] sm:$0xff]  }
 0x5be   : > { %v719_v53 = vsel %vm718_vm2, %v714_v51, inf  ;;  %v1397_v51 = vld [vmem:[#allocation7 + $0x38] sm:$0xff]   ;;  %1270 = vmatprep.subr.bf16.mxu1 %v1396_v50 }
 0x5bf   : > { %720 = vmin.xlane.f32.xlu0 %v719_v53  ;;  %v724_v59 = vshll.u32 %v723_v57, 16  ;;  %1271 = vmatpush3.bf16.msra.mxu1 %v1397_v51  ;;  %v1399_v53 = vld [vmem:[#allocation7 + $0x30] sm:$0xff]   ;;  %v1403_v57 = vld [vmem:[#allocation7 + $0x20] sm:$0xff]  }
 0x5c0   : > { %1272 = vmatprep.subr.bf16.mxu1 %v1398_v52 }
 0x5c1   : > { %v733_v54 = vpop.xlane.xlu1 %732 }
 0x5c2   : > { %vm734_vm3 = vcmp.eq.f32.partialorder %v731_v48, %v733_v54  ;;  %v739_v60 = vcvt.f32.s32 %v733_v54  ;;  %v1400_v54 = vld [vmem:[#allocation7 + $0x68] sm:$0xff]  }
 0x5c3   : > { %v735_v56 = vsel %vm734_vm3, %v730_v55, inf  ;;  %1273 = vmatpush3.bf16.msra.mxu1 %v1399_v53  ;;  %v1401_v55 = vld [vmem:[#allocation7 + $0x28] sm:$0xff]  }
 0x5c4   : > { %736 = vmin.xlane.f32.xlu1 %v735_v56  ;;  %v740_v0 = vshll.u32 %v739_v60, 16  ;;  %1274 = vmatprep.subr.bf16.mxu1 %v1400_v54  ;;  %v1402_v56 = vld [vmem:[#allocation7 + $0x60] sm:$0xff]  }
 0x5c7   : > { %1275 = vmatpush3.bf16.msra.mxu1 %v1401_v55 }
 0x5c8   : > { %1276 = vmatprep.subr.bf16.mxu1 %v1402_v56 }
 0x5cb   : > { %1277 = vmatpush3.bf16.msra.mxu1 %v1403_v57 }
 0x648   : > { %v721_v58 = vpop.xlane.xlu0 %720 }
 0x649   : > { %v722_v61 = vcvt.f32.s32 %v721_v58 }
 0x64b   : > { %v725_v62 = vadd.s32 %v724_v59, %v722_v61 }
 0x64d   : > { %vm764_vm4 = vcmp.gt.s32.totalorder %v725_v62, 0  ;;  %v737_v1 = vpop.xlane.xlu1 %736  ;;  %vm742_vm5 = vcmp.eq.s32.totalorder %v1811_v40, %v725_v62  ;;  %vm743_vm6 = vcmp.eq.s32.totalorder %v1814_v41, %v725_v62 }
 0x64e   : > { %v738_v3 = vcvt.f32.s32 %v737_v1  ;;  %v1232_v4 = vsel %vm743_vm6, 1.0, %v1600_v8  ;;  %v1235_v5 = vsel %vm764_vm4, 1.0, %v1600_v8  ;;  %v778_v6 = vsel %vm742_vm5, -inf, %v1886_v2 }
 0x64f   : > { %v757_v7 = vmul.f32 %v1232_v4, %v754_v63  ;;  %v771_v9 = vmul.f32 %v1235_v5, %v1232_v4  ;;  %v779_v10 = vsel %vm743_vm6, -inf, %v1889_v45  ;;  %v1231_v13 = vsel %vm742_vm5, 1.0, %v1600_v8  ;;  %v1405_v4 = vld [vmem:[#allocation7 + $0x18] sm:$0xff]  }
 0x650   : > { %v741_v16 = vadd.s32 %v740_v0, %v738_v3  ;;  %v782_v23 = vmax.f32 %v778_v6, %v779_v10  ;;  %v756_v14 = vmul.f32 %v1231_v13, %v754_v63  ;;  %v770_v29 = vmul.f32 %v1235_v5, %v1231_v13  ;;  %v1404_v3 = vld [vmem:[#allocation7 + $0x58] sm:$0xff]   ;;  %v1406_v5 = vld [vmem:[#allocation7 + $0x50] sm:$0xff]   ;;  %v1411_v13 = vld [vmem:[#allocation7] sm:$0xff]  }
 0x651   : > { %v1953_v31 = vadd.f32 %v771_v9, %v1897_v11  ;;  %v1956_v20 = vadd.f32 %v757_v7, %v1900_v18  ;;  %1278 = vmatprep.subr.bf16.mxu1 %v1404_v3  ;;  %v1408_v7 = vld [vmem:[#allocation7 + $0x48] sm:$0xff]  }
 0x652   : > { %vm765_vm7 = vcmp.gt.s32.totalorder %v741_v16, 0  ;;  %783 = vmax.xlane.f32.xlu0 %v782_v23  ;;  %v1959_v2 = vadd.f32 %v756_v14, %v1903_v12  ;;  %v1962_v45 = vadd.f32 %v770_v29, %v1906_v21  ;;  %vm744_vm8 = vcmp.eq.s32.totalorder %v1811_v40, %v741_v16  ;;  %1279 = vmatpush3.bf16.msra.mxu1 %v1405_v4  ;;  %v1409_v9 = vld [vmem:[#allocation7 + $0x8] sm:$0xff]  }
 0x653   : > { %vm745_vm9 = vcmp.eq.s32.totalorder %v1814_v41, %v741_v16  ;;  %v1236_v32 = vsel %vm765_vm7, 1.0, %v1600_v8  ;;  %v780_v11 = vsel %vm744_vm8, -inf, %v1912_v15  ;;  %v1233_v33 = vsel %vm744_vm8, 1.0, %v1600_v8  ;;  %1280 = vmatprep.subr.bf16.mxu1 %v1406_v5 }
 0x654   : > { %v1234_v18 = vsel %vm745_vm9, 1.0, %v1600_v8  ;;  %v781_v34 = vsel %vm745_vm9, -inf, %v1917_v30  ;;  %v758_v37 = vmul.f32 %v1233_v33, %v755_v19  ;;  %v772_v12 = vmul.f32 %v1236_v32, %v1233_v33 }
 0x655   : > { %v759_v25 = vmul.f32 %v1234_v18, %v755_v19  ;;  %v773_v38 = vmul.f32 %v1236_v32, %v1234_v18  ;;  %v785_v21 = vmax.f32 %v780_v11, %v781_v34  ;;  %v515_v23 = vstv %s1216_s30 }
 0x656   : > { %v1972_v39 = vadd.f32 %v758_v37, %v1922_v35  ;;  %v1975_v42 = vadd.f32 %v772_v12, %v1925_v22  ;;  %v516_v19 = vadd.s32 %v515_v23, %v1798_v24  ;;  %v513_v33 = vadd.s32 8, %v1798_v24 }
 0x657   : > { %v1978_v27 = vadd.f32 %v773_v38, %v1928_v36  ;;  %786 = vmax.xlane.f32.xlu1 %v785_v21  ;;  %v1981_v15 = vadd.f32 %v759_v25, %v1930_v26 }
 0x658   : > { %vm518_vm2 = vcmp.lt.s32.totalorder %v516_v19, 48  ;;  %v517_v12 = vadd.s32 %v515_v23, %v513_v33 }
 0x65a   : > { %vm519_vm6 = vcmp.lt.s32.totalorder %v517_v12, 48 }
 0x65b   : > { %v1218_v55 = vsel %vm519_vm6, 1.0, %v1600_v8 }
 0x6db   : > { %v1983_v28 = vpop.xlane.xlu0 %783 }
 0x6dc   : > { %vm788_vm10 = vcmp.eq.f32.partialorder %v778_v6, %v1983_v28  ;;  %vm789_vm11 = vcmp.eq.f32.partialorder %v779_v10, %v1983_v28  ;;  %v1407_v6 = vld [vmem:[#allocation7 + $0x10] sm:$0xff]   ;;  %v1410_v10 = vld [vmem:[#allocation7 + $0x40] sm:$0xff]  }
 0x6dd   : > { %v792_v30 = vsel %vm788_vm10, %v1811_v40, 256  ;;  %v793_v35 = vsel %vm789_vm11, %v1814_v41, 256  ;;  %1281 = vmatpush3.bf16.msra.mxu1 %v1407_v6  ;;  %vm1023_vm10 = vcmp.eq.s32.totalorder %v1798_v24, 0 }
 0x6de   : > { %vm796_vm12 = vcmp.lt.s32.totalorder %v792_v30, %v793_v35  ;;  %1282 = vmatprep.subr.bf16.mxu1 %v1408_v7 }
 0x6df   : > { %v797_v22 = vsel %vm796_vm12, %v792_v30, %v793_v35  ;;  %v840_v35 = vmax.f32 %v1983_v28, 0.0 }
 0x6e0   : > { %v1989_v43 = vpop.xlane.xlu1 %786  ;;  %v799_v36 = vshra.s32 %v797_v22, 16  ;;  %v798_v58 = vand.u32 65535, %v797_v22 }
 0x6e1   : > { %vm790_vm13 = vcmp.eq.f32.partialorder %v780_v11, %v1989_v43  ;;  %vm791_vm14 = vcmp.eq.f32.partialorder %v781_v34, %v1989_v43  ;;  %1283 = vmatpush3.bf16.msra.mxu1 %v1409_v9 }
 0x6e2   : > { %v794_v26 = vsel %vm790_vm13, %v1811_v40, 256  ;;  %v795_v44 = vsel %vm791_vm14, %v1814_v41, 256  ;;  %v801_v46 = vcvt.s32.f32 %v799_v36  ;;  %v800_v60 = vcvt.s32.f32 %v798_v58  ;;  %1284 = vmatprep.subr.bf16.mxu1 %v1410_v10 }
 0x6e3   : > { %vm812_vm15 = vcmp.lt.s32.totalorder %v794_v26, %v795_v44 }
 0x6e4   : > { %802 = vmin.xlane.f32.xlu0 %v801_v46  ;;  %v813_v47 = vsel %vm812_vm15, %v794_v26, %v795_v44  ;;  %v841_v44 = vmax.f32 %v1989_v43, 0.0 }
 0x6e5   : > { %v815_v48 = vshra.s32 %v813_v47, 16  ;;  %v814_v61 = vand.u32 65535, %v813_v47  ;;  %1285 = vmatpush3.bf16.msra.mxu1 %v1411_v13 }
 0x6e7   : > { %v817_v49 = vcvt.s32.f32 %v815_v48  ;;  %v816_v0 = vcvt.s32.f32 %v814_v61 }
 0x6e9   : > { %818 = vmin.xlane.f32.xlu1 %v817_v49 }
 0x76d   : > { %v803_v59 = vpop.xlane.xlu0 %802 }
 0x76e   : > { %vm804_vm0 = vcmp.eq.f32.partialorder %v801_v46, %v803_v59  ;;  %v809_v16 = vcvt.f32.s32 %v803_v59  ;;  %v1217_v46 = vsel %vm518_vm2, 1.0, %v1600_v8 }
 0x76f   : > { %v805_v62 = vsel %vm804_vm0, %v800_v60, inf }
 0x770   : > { %806 = vmin.xlane.f32.xlu0 %v805_v62  ;;  %v810_v32 = vshll.u32 %v809_v16, 16 }
 0x772   : > { %v819_v63 = vpop.xlane.xlu1 %818 }
 0x773   : > { %vm820_vm1 = vcmp.eq.f32.partialorder %v817_v49, %v819_v63  ;;  %v825_v14 = vcvt.f32.s32 %v819_v63 }
 0x774   : > { %v821_v1 = vsel %vm820_vm1, %v816_v0, inf }
 0x775   : > { %822 = vmin.xlane.f32.xlu1 %v821_v1  ;;  %v826_v34 = vshll.u32 %v825_v14, 16 }
 0x7f9   : > { %v807_v29 = vpop.xlane.xlu0 %806 }
 0x7fa   : > { %v808_v11 = vcvt.f32.s32 %v807_v29 }
 0x7fc   : > { %v811_v18 = vadd.s32 %v810_v32, %v808_v11 }
 0x7fe   : > { %vm828_vm3 = vcmp.eq.s32.totalorder %v1811_v40, %v811_v18  ;;  %vm850_vm4 = vcmp.gt.s32.totalorder %v811_v18, 0  ;;  %v823_v37 = vpop.xlane.xlu1 %822  ;;  %vm829_vm5 = vcmp.eq.s32.totalorder %v1814_v41, %v811_v18 }
 0x7ff   : > { %v1237_v25 = vsel %vm828_vm3, 1.0, %v1600_v8  ;;  %v824_v38 = vcvt.f32.s32 %v823_v37  ;;  %v1238_v21 = vsel %vm829_vm5, 1.0, %v1600_v8  ;;  %v1241_v30 = vsel %vm850_vm4, 1.0, %v1600_v8 }
 0x800   : > { %v856_v22 = vmul.f32 %v1241_v30, %v1237_v25  ;;  %v857_v26 = vmul.f32 %v1241_v30, %v1238_v21  ;;  %v843_v47 = vmul.f32 %v1238_v21, %v840_v35  ;;  %v842_v48 = vmul.f32 %v1237_v25, %v840_v35 }
 0x801   : > { %v827_v36 = vadd.s32 %v826_v34, %v824_v38 }
 0x802   : > { %v860_v51 = vadd.f32 %v856_v22, %v1962_v45  ;;  %v861_v54 = vadd.f32 %v857_v26, %v1953_v31  ;;  %v847_v56 = vadd.f32 %v843_v47, %v1956_v20  ;;  %v846_v60 = vadd.f32 %v842_v48, %v1959_v2 }
 0x803   : > { %vm830_vm7 = vcmp.eq.s32.totalorder %v1811_v40, %v827_v36  ;;  %vm851_vm8 = vcmp.gt.s32.totalorder %v827_v36, 0  ;;  %vm831_vm9 = vcmp.eq.s32.totalorder %v1814_v41, %v827_v36 }
 0x804   : > { %v1239_v49 = vsel %vm830_vm7, 1.0, %v1600_v8  ;;  %v1240_v28 = vsel %vm831_vm9, 1.0, %v1600_v8  ;;  %v1242_v50 = vsel %vm851_vm8, 1.0, %v1600_v8  ;;  %v1005_v59 = vmul.f32 %v1217_v46, %v860_v51 }
 0x805   : > { %v845_v43 = vmul.f32 %v1240_v28, %v841_v44  ;;  %v858_v52 = vmul.f32 %v1242_v50, %v1239_v49  ;;  %v859_v53 = vmul.f32 %v1242_v50, %v1240_v28  ;;  %v844_v40 = vmul.f32 %v1239_v49, %v841_v44 }
 0x806   : > { %v1006_v62 = vmul.f32 %v1217_v46, %v861_v54 }
 0x807   : > { %v849_v41 = vadd.f32 %v845_v43, %v1981_v15  ;;  %v862_v57 = vadd.f32 %v858_v52, %v1975_v42  ;;  %v863_v58 = vadd.f32 %v859_v53, %v1978_v27  ;;  %v848_v45 = vadd.f32 %v844_v40, %v1972_v39 }
 0x809   : > { %v865_v61 = vpack.c.bf16 %v849_v41, %v847_v56  ;;  %v1007_v63 = vmul.f32 %v1218_v55, %v862_v57  ;;  %v1008_v31 = vmul.f32 %v1218_v55, %v863_v58  ;;  %v864_v0 = vpack.c.bf16 %v848_v45, %v846_v60 }
 0x80b   : > { %994 = vmatprep.mubr.bf16.mxu1 %v865_v61  ;;  %v1009_v8 = vadd.f32 %v1007_v63, %v1005_v59  ;;  %v1016_v1 = vadd.f32 %v1008_v31, %v1006_v62 }
 0x80c   : > { %995 = vmatmul.mubr.bf16.vlgmr.msra.gmra.mxu1 %v864_v0 }
 0x80d   : > { %v1010_v20 = vrot.slane %v1009_v8, 4  ;;  %v1017_v15 = vrot.slane %v1016_v1, 4 }
 0x80f   : > { %v1011_v42 = vadd.f32 %v1010_v20, %v1009_v8  ;;  %v1018_v27 = vadd.f32 %v1017_v15, %v1016_v1 }
 0x811   : > { %v1019_v3 = vrot.slane %v1018_v27, 2  ;;  %v1012_v2 = vrot.slane %v1011_v42, 2 }
 0x813   : > { %v1013_v4 = vadd.f32 %v1012_v2, %v1011_v42  ;;  %v1020_v39 = vadd.f32 %v1019_v3, %v1018_v27 }
 0x815   : > { %v1014_v5 = vrot.slane %v1013_v4, 1  ;;  %v1021_v6 = vrot.slane %v1020_v39, 1 }
 0x817   : > { %v1015_v7 = vadd.f32 %v1014_v5, %v1013_v4  ;;  %v1022_v9 = vadd.f32 %v1021_v6, %v1020_v39 }
 0x819   : > { %v1024_v10 = vsel %vm1023_vm10, %v1015_v7, 0.0  ;;  %v1025_v13 = vsel %vm1023_vm10, %v1022_v9, 0.0 }
 0x81a   : > { %1026 = vst [vmem:[%s309_s16] sm:$0xff] %v1024_v10  ;;  %1027 = vst [vmem:[%s309_s16 + $0x8] sm:$0xff] %v1025_v13 }
 0x81b   : > { %1505 = shalt.err (!%p1502_p5)
}
 0x81c   : > { %s1506_s19 = scalar_lea.hbm %s1062_s7, 256  ;;  %s1510_s8 = scalar_lea.hbm %s2100_s6, 768 }
 0x81d   : > { %p1507_p10 = scmp.ne.s32.totalorder %s1062_s7, %s1506_s19  ;;  %p1511_p4 = scmp.lt.s32.totalorder %s1062_s7, %s2100_s6 }
 0x81e   : > { %p1512_p6 = scmp.lt.s32.totalorder %s1510_s8, %s1506_s19 }
 0x81f   : > { %p1508_p9 = pnand %p1507_p10, %p2120_p2 }
 0x820   : > { %p1513_p8 = por %p1512_p6, %p1511_p4 }
 0x821   : > { %p1509_p1 = pneg %p1508_p9 }
 0x823   : > { %p1514_p0 = pnand %p1513_p8, %p1509_p1 }
 0x825   : > { %1517 = shalt.err (!%p1514_p0)
}
 0x826   : > { %1303 = dma.vmem_to_hbm [thread:$0]  (%p2120_p2), %s1065_s15, 256, %s1062_s7, %s1034_s20  }
 0x827   : > { %s302_s14 = scalar_lea.vmem [#allocation8], %s1775_s13  ;;  %s2121_s18 = sshll.u32 %s1661_s25, 8 }
 0x828   : > { %s1047_s27 = sshll.u32 %s302_s14, 4  ;;  %s2051_s15 = scalar_lea.hbm %s2099_s5, %s2121_s18  ;;  %s2044_s27 = int_to_ptr.vmem [resolvable:$true] %s1047_s27 }
 0x829   : > { %s1029_s13 = scalar_lea.sflag [#allocation4], %s1772_s12  ;;  %s1518_s20 = scalar_lea.vmem %s2044_s27, 256 }
 0x82a   : > { %p1519_p7 = scmp.ne.s32.totalorder %s2044_s27, %s1518_s20  ;;  %s1602_s17 = smov [#allocation8]  }
 0x82b   : > { %s1522_s19 = sshll.u32 %s1602_s17, 4  ;;  %s1523_s19 = int_to_ptr.vmem [resolvable:$false] %s1522_s19 }
 0x82c   : > { %p1520_p11 = pnand %p1519_p7, %p2120_p2  ;;  %s1524_s30 = scalar_lea.vmem %s1523_s19, 512 }
 0x82d   : > { %p1525_p13 = scmp.lt.s32.totalorder %s2044_s27, %s1523_s19  ;;  %p1526_p3 = scmp.lt.s32.totalorder %s1524_s30, %s1518_s20 }
 0x82e   : > { %p1521_p12 = pneg %p1520_p11 }
 0x82f   : > { %p1527_p5 = por %p1526_p3, %p1525_p13 }
 0x831   : > { %p1528_p10 = pnand %p1527_p5, %p1521_p12 }
 0x8cc   : > { %v1286_v24 = vpop.f32.mrf.mxu1 }
 0x8ce   : > { %v1287_v16 = vpop.f32.mrf.mxu1 }
 0x8cf   : > { %v1288_v23 = vadd.f32 %v1287_v16, %v1286_v24 }
 0x8d0   : > { %v1289_v14 = vpop.f32.mrf.mxu1 }
 0x8d1   : > { %v997_v29 = vadd.f32 %v1288_v23, %v1794_v17 }
 0x8d2   : > { %v1290_v19 = vpop.f32.mrf.mxu1 }
 0x8d3   : > { %1003 = vst [vmem:[%s302_s14] sm:$0xff] %v997_v29  ;;  %v1291_v32 = vadd.f32 %v1290_v19, %v1289_v14 }
 0x8d5   : > { %v1000_v11 = vadd.f32 %v1291_v32, %v1794_v17 }
 0x8d7   : > { %1004 = vst [vmem:[%s302_s14 + $0x8] sm:$0xff] %v1000_v11 }
 0x8d8   : > { %1531 = shalt.err (!%p1528_p10)
}
 0x8d9   : > { %s1532_s25 = scalar_lea.hbm %s2051_s15, 256  ;;  %s1536_s10 = scalar_lea.hbm %s2099_s5, 768 }
 0x8da   : > { %p1533_p9 = scmp.ne.s32.totalorder %s2051_s15, %s1532_s25  ;;  %p1537_p6 = scmp.lt.s32.totalorder %s2051_s15, %s2099_s5 }
 0x8db   : > { %p1538_p8 = scmp.lt.s32.totalorder %s1536_s10, %s1532_s25 }
 0x8dc   : > { %p1534_p1 = pnand %p1533_p9, %p2120_p2 }
 0x8dd   : > { %p1539_p0 = por %p1538_p8, %p1537_p6 }
 0x8de   : > { %p1535_p4 = pneg %p1534_p1 }
 0x8e0   : > { %p1540_p7 = pnand %p1539_p0, %p1535_p4 }
 0x8e2   : > { %1543 = shalt.err (!%p1540_p7)
}
 0x8e3   : > { %s1603_s29 = smov 128   ;;  %s1604_s7 = smov 8  }
 0x8e4   : > { %1302 = dma.vmem_to_hbm [thread:$0]  (%p2120_p2), %s2044_s27, 256, %s2051_s15, %s1029_s13, %s1603_s29, %s1603_s29, %s1604_s7  }
 0x8e5 PF: > { %p1329_p11 = scmp.ge.s32.totalorder %s1590_s24, 2  ;;  %s1076_s20 = sand.u32 1, %s1578_s21  }
 0x8e6   : > { %p2122_p12 = scmp.ne.s32.totalorder %s2109_s28, 0  ;;  %s1077_s17 = scalar_lea.sflag [#allocation4], %s1076_s20 }
 0x8e8   : > { %p1318_p13 = pnand %p1329_p11, %p2122_p12 }
 0x8ea   : > { %p1319_p3 = pneg %p1318_p13 }
 0x8ec   : > { %1569 = dma.done.wait (%p1319_p3), %s1077_s17, 256  }
 0x8ed   : > { %1571 = vsyncadd (%p1319_p3), %s1077_s17, 4294967040  ;;  %s1086_s19 = scalar_lea.sflag [#allocation10], %s1076_s20 }
 0x8ee   : > { %1573 = dma.done.wait (%p1319_p3), %s1086_s19, 256  }
 0x8ef   : > { %1575 = vsyncadd (%p1319_p3), %s1086_s19, 4294967040  ;;  %p24_p2 = scmp.ge.s32.totalorder %s1714_s26, 5   ;;  %s2123_s21 = smov %s1582_s22 }
 0x8f0   : > { %s2124_s22 = smov %s1586_s23  ;;  %s2125_s23 = smov %s1723_s9 }
 0x8f1   : > { %s2126_s24 = smov %s1714_s26  ;;  %26 = sbr.rel (!%p24_p2) target bundleno = 8 (0x8), region = 110 }
 0x8f6   :  { %1091 = vsyncpa [#allocation3], 1 }
 0x8f7   :  { %1093 = vsyncpa [#allocation3 + $0x1], 1 }
 0x8f8   :  { %1094 = vsyncpa [#allocation6], 1 }
 0x8f9   :  { %1095 = vsyncpa [#allocation4], 1 }
 0x8fa   :  { %1097 = vsyncpa [#allocation4 + $0x1], 1 }
 0x8fb   :  { %1098 = vsyncpa [#allocation10], 1 }
 0x8fc   :  { %1100 = vsyncpa [#allocation10 + $0x1], 1 }

</bundles_post_ra>
